<compile_context>
chip_gen: v5e
topology: v5e:2x2
jax: 0.10.0
libtpu: 0.0.40
codegen_flags: <defaults>
</compile_context>

<pallas_src>
import math
from itertools import combinations

import numpy as np
import jax
import jax.numpy as jnp
from jax.experimental import pallas as pl
from jax.experimental.pallas import tpu as pltpu


# ----------------------- parameter construction (plain numpy glue) -----------
def map_RBS(n, k):
    """Basis vectors of the Hamming-weight-k subspace -> lexicographic index."""
    return {basis: idx for idx, basis in enumerate(combinations(range(n), k))}


def rbs_unitaries_np(n, k, list_gates):
    """Equivalent of RBS_Unitaries: per qubit pair, the (cos, sin, id) component
    matrices in the Hamming-weight-k basis (float32, 0/+-1 entries)."""
    mapping = map_RBS(n, k)
    D = math.comb(n, k)
    out = {}
    for (q0, q1) in set(list_gates):
        cos_m = np.zeros((D, D), dtype=np.float32)
        sin_m = np.zeros((D, D), dtype=np.float32)
        id_m = np.zeros((D, D), dtype=np.float32)
        for basis, idx in mapping.items():
            in0, in1 = q0 in basis, q1 in basis
            if in0 and not in1:
                partner = tuple(sorted((set(basis) - {q0}) | {q1}))
                jdx = mapping[partner]
                cos_m[idx, idx] = 1.0
                cos_m[jdx, jdx] = 1.0
                sin_m[idx, jdx] = 1.0
                sin_m[jdx, idx] = -1.0
            elif in0 == in1:          # both or neither qubit occupied -> identity
                id_m[idx, idx] = 1.0
            # (in1 and not in0) is handled when its partner state is visited.
        out[(q0, q1)] = (cos_m, sin_m, id_m)
    return out


# ----------------------- Pallas kernel (hot path) -----------------------------
def dense_rbs_kernel(cs_ref, sn_ref, a_ref, b_ref, c_ref, x_ref, o_ref):
    # cs_ref, sn_ref : (L,)      SMEM  cos/sin of the gate angles
    # a/b/c_ref      : (L, D, D) VMEM  fixed RBS component matrices
    # x_ref          : (B, D, D) VMEM  input density operators
    # o_ref          : (B, D, D) VMEM  output density operators
    L = a_ref.shape[0]
    B = x_ref.shape[0]

    # Per-gate unitaries on the VPU: SMEM scalar * 0/+-1 VMEM matrices.
    us = [a_ref[l] * cs_ref[l] + b_ref[l] * sn_ref[l] + c_ref[l] for l in range(L)]

    # Tree-reduce the fused circuit unitary W = U_{L-1} @ ... @ U_1 @ U_0.
    # Each round's matmuls are mutually independent, so they pipeline through
    # the MXU instead of forming an L-1-deep dependency chain.
    while len(us) > 1:
        nxt = []
        for i in range(0, len(us) - 1, 2):
            # us[i] covers the lower gate range, us[i+1] the next one up.
            nxt.append(jnp.dot(us[i + 1], us[i], preferred_element_type=jnp.float32))
        if len(us) % 2 == 1:
            nxt.append(us[-1])
        us = nxt
    w = us[0]

    # rho -> W @ rho @ W^T for every batch element (two MXU matmuls each,
    # right factor contracted on its last axis so no explicit transpose).
    for b in range(B):
        y = jnp.dot(w, x_ref[b], preferred_element_type=jnp.float32)      # W @ rho_b
        o_ref[b] = jax.lax.dot_general(                                    # (W rho_b) @ W^T
            y, w,
            dimension_numbers=(((1,), (1,)), ((), ())),
            preferred_element_type=jnp.float32,
        )


def dense_rbs_density(input_state, a_stack, b_stack, c_stack, angles):
    """Forward pass of Dense_RBS_density."""
    B, D, _ = input_state.shape
    cs = jnp.cos(angles).astype(jnp.float32)
    sn = jnp.sin(angles).astype(jnp.float32)
    return pl.pallas_call(
        dense_rbs_kernel,
        out_shape=jax.ShapeDtypeStruct((B, D, D), jnp.float32),
        in_specs=[
            pl.BlockSpec(memory_space=pltpu.MemorySpace.SMEM),   # cos(theta)
            pl.BlockSpec(memory_space=pltpu.MemorySpace.SMEM),   # sin(theta)
            pl.BlockSpec(memory_space=pltpu.MemorySpace.VMEM),   # A stack
            pl.BlockSpec(memory_space=pltpu.MemorySpace.VMEM),   # B stack
            pl.BlockSpec(memory_space=pltpu.MemorySpace.VMEM),   # C stack
            pl.BlockSpec(memory_space=pltpu.MemorySpace.VMEM),   # input densities
        ],
        out_specs=pl.BlockSpec(memory_space=pltpu.MemorySpace.VMEM),
    )(cs, sn, a_stack, b_stack, c_stack, input_state.astype(jnp.float32))


# ----------------------- reference (pure JAX, sequential like PyTorch) --------
def reference(input_state, a_stack, b_stack, c_stack, angles):
    x = input_state.astype(jnp.float32)
    for l in range(a_stack.shape[0]):
        u = (a_stack[l] * jnp.cos(angles[l])
             + b_stack[l] * jnp.sin(angles[l])
             + c_stack[l])
        x = jnp.matmul(jnp.matmul(u[None, :, :], x), u.T[None, :, :])
    return x


if __name__ == "__main__":
    I = 4                      # image side
    n = 2 * I                  # 8 qubits
    D = math.comb(n, 2)        # 28 = dim of Hamming-weight-2 basis
    B = 2                      # batch
    list_gates = [(0, 1), (2, 3), (4, 5), (6, 7), (1, 2), (3, 4), (5, 6), (0, 1)]
    L = len(list_gates)

    unitaries = rbs_unitaries_np(n, 2, list_gates)
    a_stack = jnp.asarray(np.stack([unitaries[g][0] for g in list_gates]))
    b_stack = jnp.asarray(np.stack([unitaries[g][1] for g in list_gates]))
    c_stack = jnp.asarray(np.stack([unitaries[g][2] for g in list_gates]))

    key = jax.random.PRNGKey(0)
    k_angle, k_state = jax.random.split(key)
    angles = jax.random.uniform(k_angle, (L,), dtype=jnp.float32)
    x = jax.random.normal(k_state, (B, D, D), dtype=jnp.float32)

    out = dense_rbs_density(x, a_stack, b_stack, c_stack, angles)
    out = jax.block_until_ready(out)

    ref = reference(x, a_stack, b_stack, c_stack, angles)
    assert out.shape == (B, D, D)
    np.testing.assert_allclose(np.asarray(out), np.asarray(ref),
                               rtol=1e-5, atol=1e-5)
    print("KERNEL_OK")
</pallas_src>

<mosaic_0001>
module attributes {stable_mosaic.version = 11 : i64} {
  func.func @dense_rbs_kernel(%arg0: memref<8xf32, #tpu.memory_space<smem>>, %arg1: memref<8xf32, #tpu.memory_space<smem>>, %arg2: memref<8x28x28xf32, #tpu.memory_space<vmem>>, %arg3: memref<8x28x28xf32, #tpu.memory_space<vmem>>, %arg4: memref<8x28x28xf32, #tpu.memory_space<vmem>>, %arg5: memref<2x28x28xf32, #tpu.memory_space<vmem>>, %arg6: memref<2x28x28xf32, #tpu.memory_space<vmem>>) attributes {dimension_semantics = [], scalar_prefetch = 0 : i64, scratch_operands = 0 : i64, tpu.core_type = #tpu.core_type<tc>} {
    %c0 = arith.constant 0 : index
    %c0_0 = arith.constant 0 : index
    %c0_1 = arith.constant 0 : index
    %0 = vector.load %arg2[%c0, %c0_0, %c0_1] : memref<8x28x28xf32, #tpu.memory_space<vmem>>, vector<1x28x28xf32>
    %1 = vector.shape_cast %0 : vector<1x28x28xf32> to vector<28x28xf32>
    %c0_2 = arith.constant 0 : index
    %2 = memref.load %arg0[%c0_2] : memref<8xf32, #tpu.memory_space<smem>>
    %3 = vector.broadcast %2 : f32 to vector<28x28xf32>
    %4 = arith.mulf %1, %3 : vector<28x28xf32>
    %c0_3 = arith.constant 0 : index
    %c0_4 = arith.constant 0 : index
    %c0_5 = arith.constant 0 : index
    %5 = vector.load %arg3[%c0_3, %c0_4, %c0_5] : memref<8x28x28xf32, #tpu.memory_space<vmem>>, vector<1x28x28xf32>
    %6 = vector.shape_cast %5 : vector<1x28x28xf32> to vector<28x28xf32>
    %c0_6 = arith.constant 0 : index
    %7 = memref.load %arg1[%c0_6] : memref<8xf32, #tpu.memory_space<smem>>
    %8 = vector.broadcast %7 : f32 to vector<28x28xf32>
    %9 = arith.mulf %6, %8 : vector<28x28xf32>
    %10 = arith.addf %4, %9 : vector<28x28xf32>
    %c0_7 = arith.constant 0 : index
    %c0_8 = arith.constant 0 : index
    %c0_9 = arith.constant 0 : index
    %11 = vector.load %arg4[%c0_7, %c0_8, %c0_9] : memref<8x28x28xf32, #tpu.memory_space<vmem>>, vector<1x28x28xf32>
    %12 = vector.shape_cast %11 : vector<1x28x28xf32> to vector<28x28xf32>
    %13 = arith.addf %10, %12 : vector<28x28xf32>
    %c1 = arith.constant 1 : index
    %c0_10 = arith.constant 0 : index
    %c0_11 = arith.constant 0 : index
    %14 = vector.load %arg2[%c1, %c0_10, %c0_11] : memref<8x28x28xf32, #tpu.memory_space<vmem>>, vector<1x28x28xf32>
    %15 = vector.shape_cast %14 : vector<1x28x28xf32> to vector<28x28xf32>
    %c1_12 = arith.constant 1 : index
    %16 = memref.load %arg0[%c1_12] : memref<8xf32, #tpu.memory_space<smem>>
    %17 = vector.broadcast %16 : f32 to vector<28x28xf32>
    %18 = arith.mulf %15, %17 : vector<28x28xf32>
    %c1_13 = arith.constant 1 : index
    %c0_14 = arith.constant 0 : index
    %c0_15 = arith.constant 0 : index
    %19 = vector.load %arg3[%c1_13, %c0_14, %c0_15] : memref<8x28x28xf32, #tpu.memory_space<vmem>>, vector<1x28x28xf32>
    %20 = vector.shape_cast %19 : vector<1x28x28xf32> to vector<28x28xf32>
    %c1_16 = arith.constant 1 : index
    %21 = memref.load %arg1[%c1_16] : memref<8xf32, #tpu.memory_space<smem>>
    %22 = vector.broadcast %21 : f32 to vector<28x28xf32>
    %23 = arith.mulf %20, %22 : vector<28x28xf32>
    %24 = arith.addf %18, %23 : vector<28x28xf32>
    %c1_17 = arith.constant 1 : index
    %c0_18 = arith.constant 0 : index
    %c0_19 = arith.constant 0 : index
    %25 = vector.load %arg4[%c1_17, %c0_18, %c0_19] : memref<8x28x28xf32, #tpu.memory_space<vmem>>, vector<1x28x28xf32>
    %26 = vector.shape_cast %25 : vector<1x28x28xf32> to vector<28x28xf32>
    %27 = arith.addf %24, %26 : vector<28x28xf32>
    %c2 = arith.constant 2 : index
    %c0_20 = arith.constant 0 : index
    %c0_21 = arith.constant 0 : index
    %28 = vector.load %arg2[%c2, %c0_20, %c0_21] : memref<8x28x28xf32, #tpu.memory_space<vmem>>, vector<1x28x28xf32>
    %29 = vector.shape_cast %28 : vector<1x28x28xf32> to vector<28x28xf32>
    %c2_22 = arith.constant 2 : index
    %30 = memref.load %arg0[%c2_22] : memref<8xf32, #tpu.memory_space<smem>>
    %31 = vector.broadcast %30 : f32 to vector<28x28xf32>
    %32 = arith.mulf %29, %31 : vector<28x28xf32>
    %c2_23 = arith.constant 2 : index
    %c0_24 = arith.constant 0 : index
    %c0_25 = arith.constant 0 : index
    %33 = vector.load %arg3[%c2_23, %c0_24, %c0_25] : memref<8x28x28xf32, #tpu.memory_space<vmem>>, vector<1x28x28xf32>
    %34 = vector.shape_cast %33 : vector<1x28x28xf32> to vector<28x28xf32>
    %c2_26 = arith.constant 2 : index
    %35 = memref.load %arg1[%c2_26] : memref<8xf32, #tpu.memory_space<smem>>
    %36 = vector.broadcast %35 : f32 to vector<28x28xf32>
    %37 = arith.mulf %34, %36 : vector<28x28xf32>
    %38 = arith.addf %32, %37 : vector<28x28xf32>
    %c2_27 = arith.constant 2 : index
    %c0_28 = arith.constant 0 : index
    %c0_29 = arith.constant 0 : index
    %39 = vector.load %arg4[%c2_27, %c0_28, %c0_29] : memref<8x28x28xf32, #tpu.memory_space<vmem>>, vector<1x28x28xf32>
    %40 = vector.shape_cast %39 : vector<1x28x28xf32> to vector<28x28xf32>
    %41 = arith.addf %38, %40 : vector<28x28xf32>
    %c3 = arith.constant 3 : index
    %c0_30 = arith.constant 0 : index
    %c0_31 = arith.constant 0 : index
    %42 = vector.load %arg2[%c3, %c0_30, %c0_31] : memref<8x28x28xf32, #tpu.memory_space<vmem>>, vector<1x28x28xf32>
    %43 = vector.shape_cast %42 : vector<1x28x28xf32> to vector<28x28xf32>
    %c3_32 = arith.constant 3 : index
    %44 = memref.load %arg0[%c3_32] : memref<8xf32, #tpu.memory_space<smem>>
    %45 = vector.broadcast %44 : f32 to vector<28x28xf32>
    %46 = arith.mulf %43, %45 : vector<28x28xf32>
    %c3_33 = arith.constant 3 : index
    %c0_34 = arith.constant 0 : index
    %c0_35 = arith.constant 0 : index
    %47 = vector.load %arg3[%c3_33, %c0_34, %c0_35] : memref<8x28x28xf32, #tpu.memory_space<vmem>>, vector<1x28x28xf32>
    %48 = vector.shape_cast %47 : vector<1x28x28xf32> to vector<28x28xf32>
    %c3_36 = arith.constant 3 : index
    %49 = memref.load %arg1[%c3_36] : memref<8xf32, #tpu.memory_space<smem>>
    %50 = vector.broadcast %49 : f32 to vector<28x28xf32>
    %51 = arith.mulf %48, %50 : vector<28x28xf32>
    %52 = arith.addf %46, %51 : vector<28x28xf32>
    %c3_37 = arith.constant 3 : index
    %c0_38 = arith.constant 0 : index
    %c0_39 = arith.constant 0 : index
    %53 = vector.load %arg4[%c3_37, %c0_38, %c0_39] : memref<8x28x28xf32, #tpu.memory_space<vmem>>, vector<1x28x28xf32>
    %54 = vector.shape_cast %53 : vector<1x28x28xf32> to vector<28x28xf32>
    %55 = arith.addf %52, %54 : vector<28x28xf32>
    %c4 = arith.constant 4 : index
    %c0_40 = arith.constant 0 : index
    %c0_41 = arith.constant 0 : index
    %56 = vector.load %arg2[%c4, %c0_40, %c0_41] : memref<8x28x28xf32, #tpu.memory_space<vmem>>, vector<1x28x28xf32>
    %57 = vector.shape_cast %56 : vector<1x28x28xf32> to vector<28x28xf32>
    %c4_42 = arith.constant 4 : index
    %58 = memref.load %arg0[%c4_42] : memref<8xf32, #tpu.memory_space<smem>>
    %59 = vector.broadcast %58 : f32 to vector<28x28xf32>
    %60 = arith.mulf %57, %59 : vector<28x28xf32>
    %c4_43 = arith.constant 4 : index
    %c0_44 = arith.constant 0 : index
    %c0_45 = arith.constant 0 : index
    %61 = vector.load %arg3[%c4_43, %c0_44, %c0_45] : memref<8x28x28xf32, #tpu.memory_space<vmem>>, vector<1x28x28xf32>
    %62 = vector.shape_cast %61 : vector<1x28x28xf32> to vector<28x28xf32>
    %c4_46 = arith.constant 4 : index
    %63 = memref.load %arg1[%c4_46] : memref<8xf32, #tpu.memory_space<smem>>
    %64 = vector.broadcast %63 : f32 to vector<28x28xf32>
    %65 = arith.mulf %62, %64 : vector<28x28xf32>
    %66 = arith.addf %60, %65 : vector<28x28xf32>
    %c4_47 = arith.constant 4 : index
    %c0_48 = arith.constant 0 : index
    %c0_49 = arith.constant 0 : index
    %67 = vector.load %arg4[%c4_47, %c0_48, %c0_49] : memref<8x28x28xf32, #tpu.memory_space<vmem>>, vector<1x28x28xf32>
    %68 = vector.shape_cast %67 : vector<1x28x28xf32> to vector<28x28xf32>
    %69 = arith.addf %66, %68 : vector<28x28xf32>
    %c5 = arith.constant 5 : index
    %c0_50 = arith.constant 0 : index
    %c0_51 = arith.constant 0 : index
    %70 = vector.load %arg2[%c5, %c0_50, %c0_51] : memref<8x28x28xf32, #tpu.memory_space<vmem>>, vector<1x28x28xf32>
    %71 = vector.shape_cast %70 : vector<1x28x28xf32> to vector<28x28xf32>
    %c5_52 = arith.constant 5 : index
    %72 = memref.load %arg0[%c5_52] : memref<8xf32, #tpu.memory_space<smem>>
    %73 = vector.broadcast %72 : f32 to vector<28x28xf32>
    %74 = arith.mulf %71, %73 : vector<28x28xf32>
    %c5_53 = arith.constant 5 : index
    %c0_54 = arith.constant 0 : index
    %c0_55 = arith.constant 0 : index
    %75 = vector.load %arg3[%c5_53, %c0_54, %c0_55] : memref<8x28x28xf32, #tpu.memory_space<vmem>>, vector<1x28x28xf32>
    %76 = vector.shape_cast %75 : vector<1x28x28xf32> to vector<28x28xf32>
    %c5_56 = arith.constant 5 : index
    %77 = memref.load %arg1[%c5_56] : memref<8xf32, #tpu.memory_space<smem>>
    %78 = vector.broadcast %77 : f32 to vector<28x28xf32>
    %79 = arith.mulf %76, %78 : vector<28x28xf32>
    %80 = arith.addf %74, %79 : vector<28x28xf32>
    %c5_57 = arith.constant 5 : index
    %c0_58 = arith.constant 0 : index
    %c0_59 = arith.constant 0 : index
    %81 = vector.load %arg4[%c5_57, %c0_58, %c0_59] : memref<8x28x28xf32, #tpu.memory_space<vmem>>, vector<1x28x28xf32>
    %82 = vector.shape_cast %81 : vector<1x28x28xf32> to vector<28x28xf32>
    %83 = arith.addf %80, %82 : vector<28x28xf32>
    %c6 = arith.constant 6 : index
    %c0_60 = arith.constant 0 : index
    %c0_61 = arith.constant 0 : index
    %84 = vector.load %arg2[%c6, %c0_60, %c0_61] : memref<8x28x28xf32, #tpu.memory_space<vmem>>, vector<1x28x28xf32>
    %85 = vector.shape_cast %84 : vector<1x28x28xf32> to vector<28x28xf32>
    %c6_62 = arith.constant 6 : index
    %86 = memref.load %arg0[%c6_62] : memref<8xf32, #tpu.memory_space<smem>>
    %87 = vector.broadcast %86 : f32 to vector<28x28xf32>
    %88 = arith.mulf %85, %87 : vector<28x28xf32>
    %c6_63 = arith.constant 6 : index
    %c0_64 = arith.constant 0 : index
    %c0_65 = arith.constant 0 : index
    %89 = vector.load %arg3[%c6_63, %c0_64, %c0_65] : memref<8x28x28xf32, #tpu.memory_space<vmem>>, vector<1x28x28xf32>
    %90 = vector.shape_cast %89 : vector<1x28x28xf32> to vector<28x28xf32>
    %c6_66 = arith.constant 6 : index
    %91 = memref.load %arg1[%c6_66] : memref<8xf32, #tpu.memory_space<smem>>
    %92 = vector.broadcast %91 : f32 to vector<28x28xf32>
    %93 = arith.mulf %90, %92 : vector<28x28xf32>
    %94 = arith.addf %88, %93 : vector<28x28xf32>
    %c6_67 = arith.constant 6 : index
    %c0_68 = arith.constant 0 : index
    %c0_69 = arith.constant 0 : index
    %95 = vector.load %arg4[%c6_67, %c0_68, %c0_69] : memref<8x28x28xf32, #tpu.memory_space<vmem>>, vector<1x28x28xf32>
    %96 = vector.shape_cast %95 : vector<1x28x28xf32> to vector<28x28xf32>
    %97 = arith.addf %94, %96 : vector<28x28xf32>
    %c7 = arith.constant 7 : index
    %c0_70 = arith.constant 0 : index
    %c0_71 = arith.constant 0 : index
    %98 = vector.load %arg2[%c7, %c0_70, %c0_71] : memref<8x28x28xf32, #tpu.memory_space<vmem>>, vector<1x28x28xf32>
    %99 = vector.shape_cast %98 : vector<1x28x28xf32> to vector<28x28xf32>
    %c7_72 = arith.constant 7 : index
    %100 = memref.load %arg0[%c7_72] : memref<8xf32, #tpu.memory_space<smem>>
    %101 = vector.broadcast %100 : f32 to vector<28x28xf32>
    %102 = arith.mulf %99, %101 : vector<28x28xf32>
    %c7_73 = arith.constant 7 : index
    %c0_74 = arith.constant 0 : index
    %c0_75 = arith.constant 0 : index
    %103 = vector.load %arg3[%c7_73, %c0_74, %c0_75] : memref<8x28x28xf32, #tpu.memory_space<vmem>>, vector<1x28x28xf32>
    %104 = vector.shape_cast %103 : vector<1x28x28xf32> to vector<28x28xf32>
    %c7_76 = arith.constant 7 : index
    %105 = memref.load %arg1[%c7_76] : memref<8xf32, #tpu.memory_space<smem>>
    %106 = vector.broadcast %105 : f32 to vector<28x28xf32>
    %107 = arith.mulf %104, %106 : vector<28x28xf32>
    %108 = arith.addf %102, %107 : vector<28x28xf32>
    %c7_77 = arith.constant 7 : index
    %c0_78 = arith.constant 0 : index
    %c0_79 = arith.constant 0 : index
    %109 = vector.load %arg4[%c7_77, %c0_78, %c0_79] : memref<8x28x28xf32, #tpu.memory_space<vmem>>, vector<1x28x28xf32>
    %110 = vector.shape_cast %109 : vector<1x28x28xf32> to vector<28x28xf32>
    %111 = arith.addf %108, %110 : vector<28x28xf32>
    %cst = arith.constant dense<0.000000e+00> : vector<28x28xf32>
    %112 = tpu.matmul %27, %13, %cst {dimension_numbers = #tpu.dot_dimension_numbers<[1], [0], [0], [1], [0, 0, 1, 1], [], []>} : vector<28x28xf32>, vector<28x28xf32>, vector<28x28xf32> -> vector<28x28xf32>
    %cst_80 = arith.constant dense<0.000000e+00> : vector<28x28xf32>
    %113 = tpu.matmul %55, %41, %cst_80 {dimension_numbers = #tpu.dot_dimension_numbers<[1], [0], [0], [1], [0, 0, 1, 1], [], []>} : vector<28x28xf32>, vector<28x28xf32>, vector<28x28xf32> -> vector<28x28xf32>
    %cst_81 = arith.constant dense<0.000000e+00> : vector<28x28xf32>
    %114 = tpu.matmul %83, %69, %cst_81 {dimension_numbers = #tpu.dot_dimension_numbers<[1], [0], [0], [1], [0, 0, 1, 1], [], []>} : vector<28x28xf32>, vector<28x28xf32>, vector<28x28xf32> -> vector<28x28xf32>
    %cst_82 = arith.constant dense<0.000000e+00> : vector<28x28xf32>
    %115 = tpu.matmul %111, %97, %cst_82 {dimension_numbers = #tpu.dot_dimension_numbers<[1], [0], [0], [1], [0, 0, 1, 1], [], []>} : vector<28x28xf32>, vector<28x28xf32>, vector<28x28xf32> -> vector<28x28xf32>
    %cst_83 = arith.constant dense<0.000000e+00> : vector<28x28xf32>
    %116 = tpu.matmul %113, %112, %cst_83 {dimension_numbers = #tpu.dot_dimension_numbers<[1], [0], [0], [1], [0, 0, 1, 1], [], []>} : vector<28x28xf32>, vector<28x28xf32>, vector<28x28xf32> -> vector<28x28xf32>
    %cst_84 = arith.constant dense<0.000000e+00> : vector<28x28xf32>
    %117 = tpu.matmul %115, %114, %cst_84 {dimension_numbers = #tpu.dot_dimension_numbers<[1], [0], [0], [1], [0, 0, 1, 1], [], []>} : vector<28x28xf32>, vector<28x28xf32>, vector<28x28xf32> -> vector<28x28xf32>
    %cst_85 = arith.constant dense<0.000000e+00> : vector<28x28xf32>
    %118 = tpu.matmul %117, %116, %cst_85 {dimension_numbers = #tpu.dot_dimension_numbers<[1], [0], [0], [1], [0, 0, 1, 1], [], []>} : vector<28x28xf32>, vector<28x28xf32>, vector<28x28xf32> -> vector<28x28xf32>
    %c0_86 = arith.constant 0 : index
    %c0_87 = arith.constant 0 : index
    %c0_88 = arith.constant 0 : index
    %119 = vector.load %arg5[%c0_86, %c0_87, %c0_88] : memref<2x28x28xf32, #tpu.memory_space<vmem>>, vector<1x28x28xf32>
    %120 = vector.shape_cast %119 : vector<1x28x28xf32> to vector<28x28xf32>
    %cst_89 = arith.constant dense<0.000000e+00> : vector<28x28xf32>
    %121 = tpu.matmul %118, %120, %cst_89 {dimension_numbers = #tpu.dot_dimension_numbers<[1], [0], [0], [1], [0, 0, 1, 1], [], []>} : vector<28x28xf32>, vector<28x28xf32>, vector<28x28xf32> -> vector<28x28xf32>
    %cst_90 = arith.constant dense<0.000000e+00> : vector<28x28xf32>
    %122 = tpu.matmul %121, %118, %cst_90 {dimension_numbers = #tpu.dot_dimension_numbers<[1], [1], [0], [0], [0, 0, 1, 0], [], []>} : vector<28x28xf32>, vector<28x28xf32>, vector<28x28xf32> -> vector<28x28xf32>
    %c0_91 = arith.constant 0 : index
    %c0_92 = arith.constant 0 : index
    %c0_93 = arith.constant 0 : index
    %123 = vector.load %arg6[%c0_91, %c0_92, %c0_93] : memref<2x28x28xf32, #tpu.memory_space<vmem>>, vector<1x28x28xf32>
    %124 = vector.shape_cast %123 : vector<1x28x28xf32> to vector<28x28xf32>
    %125 = vector.shape_cast %122 : vector<28x28xf32> to vector<1x28x28xf32>
    tpu.vector_store %arg6[%c0_91, %c0_92, %c0_93], %125 {strides = array<i32>} : memref<2x28x28xf32, #tpu.memory_space<vmem>>, vector<1x28x28xf32>,
    %c1_94 = arith.constant 1 : index
    %c0_95 = arith.constant 0 : index
    %c0_96 = arith.constant 0 : index
    %126 = vector.load %arg5[%c1_94, %c0_95, %c0_96] : memref<2x28x28xf32, #tpu.memory_space<vmem>>, vector<1x28x28xf32>
    %127 = vector.shape_cast %126 : vector<1x28x28xf32> to vector<28x28xf32>
    %cst_97 = arith.constant dense<0.000000e+00> : vector<28x28xf32>
    %128 = tpu.matmul %118, %127, %cst_97 {dimension_numbers = #tpu.dot_dimension_numbers<[1], [0], [0], [1], [0, 0, 1, 1], [], []>} : vector<28x28xf32>, vector<28x28xf32>, vector<28x28xf32> -> vector<28x28xf32>
    %cst_98 = arith.constant dense<0.000000e+00> : vector<28x28xf32>
    %129 = tpu.matmul %128, %118, %cst_98 {dimension_numbers = #tpu.dot_dimension_numbers<[1], [1], [0], [0], [0, 0, 1, 0], [], []>} : vector<28x28xf32>, vector<28x28xf32>, vector<28x28xf32> -> vector<28x28xf32>
    %c1_99 = arith.constant 1 : index
    %c0_100 = arith.constant 0 : index
    %c0_101 = arith.constant 0 : index
    %130 = vector.load %arg6[%c1_99, %c0_100, %c0_101] : memref<2x28x28xf32, #tpu.memory_space<vmem>>, vector<1x28x28xf32>
    %131 = vector.shape_cast %130 : vector<1x28x28xf32> to vector<28x28xf32>
    %132 = vector.shape_cast %129 : vector<28x28xf32> to vector<1x28x28xf32>
    tpu.vector_store %arg6[%c1_99, %c0_100, %c0_101], %132 {strides = array<i32>} : memref<2x28x28xf32, #tpu.memory_space<vmem>>, vector<1x28x28xf32>,
    return
  }
}

</mosaic_0001>

<bundles_post_ra>
// kernel: tpu_custom_call.1
= control target key start
LH: loop header
LB: loop body
LE: loop exit
PB: predicated region body
PF: predicated region fallthrough
CT: control target
= control target key end

     0   :  { %11 = vsyncpa [#allocation3], 0  ;;  %s1576_s0 = inlined_call_operand.vmem [shape: f32[8], index: 0, kind: input, shape index: {}]   ;;  %s1577_s1 = inlined_call_operand.vmem [shape: f32[8], index: 1, kind: input, shape index: {}]   ;;  %s1578_s2 = inlined_call_operand.vmem [shape: f32[8,28,28], index: 2, kind: input, shape index: {}]   ;;  %s1579_s3 = inlined_call_operand.vmem [shape: f32[8,28,28], index: 3, kind: input, shape index: {}]   ;;  %s1580_s4 = inlined_call_operand.vmem [shape: f32[8,28,28], index: 4, kind: input, shape index: {}]   ;;  %s1581_s5 = inlined_call_operand.vmem [shape: f32[2,28,28], index: 5, kind: input, shape index: {}]   ;;  %s1582_s6 = inlined_call_operand.vmem [shape: f32[2,28,28], index: 6, kind: output, shape index: {}]  }
   0x1   :  { %s18_s23 = sshll.u32 %s1576_s0, 4  ;;  %s19_s23 = int_to_ptr.vmem [resolvable:$true] %s18_s23 }
   0x2   :  { %12 = vsyncpa [#allocation5], 0  ;;  %s27_s26 = sshll.u32 %s1577_s1, 4  ;;  %s1027_s27 = smov [#allocation2]   ;;  %s28_s26 = int_to_ptr.vmem [resolvable:$true] %s27_s26 }
   0x3   :  { %21 = dma.vmem_to_smem %s19_s23, 16, %s1027_s27, [#allocation3]  }
   0x4   :  { %s1028_s28 = smov [#allocation4]  }
   0x5   :  { %30 = dma.vmem_to_smem %s28_s26, 16, %s1028_s28, [#allocation5]  }
   0x6   :  { %1023 = dma.done.wait [#allocation3], 16  }
   0x7   :  { %1024 = vsyncadd [#allocation3], 4294967280 }
   0x8   :  { %1025 = dma.done.wait [#allocation5], 16  }
   0x9   :  { %1026 = vsyncadd [#allocation5], 4294967280 }
   0xa   :  { %47 = sfence }
   0xb   :  { %s52_s29 = sld [smem:[#allocation2]]  ;;  %v51_v0 = vld [vmem:[%s1578_s2 + $0x18] sm:$0xf]  ;;  %v50_v2 = vld [vmem:[%s1578_s2 + $0x10] sm:$0xff]  ;;  %v49_v3 = vld [vmem:[%s1578_s2 + $0x8] sm:$0xff]  ;;  %vm338_vm0 = vcmask 1043456  }
   0xc   :  { %s62_s30 = sld [smem:[#allocation4]]  ;;  %v61_v1 = vld [vmem:[%s1579_s3 + $0x18] sm:$0xf]  ;;  %v60_v4 = vld [vmem:[%s1579_s3 + $0x10] sm:$0xff]  ;;  %v59_v5 = vld [vmem:[%s1579_s3 + $0x8] sm:$0xff]  ;;  %vm325_vm1 = vcmask 228352  }
   0xd   :  { %s1070_s7 = sld [smem:[#allocation2 + $0x1]]  ;;  %v48_v6 = vld [vmem:[%s1578_s2] sm:$0xff]  ;;  %v819_v19 = vld [vmem:[%s1578_s2 + $0x28] sm:$0xff]  ;;  %v75_v21 = vld [vmem:[%s1580_s4 + $0x18] sm:$0xf]  ;;  %vm727_vm2 = vcmask 224256  }
   0xe   :  { %s1075_s9 = sld [smem:[#allocation4 + $0x1]]  ;;  %v58_v8 = vld [vmem:[%s1579_s3] sm:$0xff]  ;;  %v824_v20 = vld [vmem:[%s1579_s3 + $0x28] sm:$0xff]  ;;  %v74_v22 = vld [vmem:[%s1580_s4 + $0x10] sm:$0xff] }
   0xf   :  { %s1086_s15 = sld [smem:[#allocation2 + $0x4]]  ;;  %v818_v13 = vld [vmem:[%s1578_s2 + $0x20] sm:$0xff]  ;;  %v863_v30 = vld [vmem:[%s1578_s2 + $0x98] sm:$0xf]  ;;  %v73_v31 = vld [vmem:[%s1580_s4 + $0x8] sm:$0xff] }
  0x10   :  { %s1100_s24 = sld [smem:[#allocation4 + $0x4]]  ;;  %v823_v18 = vld [vmem:[%s1579_s3 + $0x20] sm:$0xff]  ;;  %v862_v36 = vld [vmem:[%s1578_s2 + $0x90] sm:$0xff]  ;;  %v861_v37 = vld [vmem:[%s1578_s2 + $0x88] sm:$0xff] }
  0x11   :  { %v53_v7 = vstv %s52_s29  ;;  %s1105_s27 = sld [smem:[#allocation2 + $0x2]]  ;;  %v72_v40 = vld [vmem:[%s1580_s4] sm:$0xff]  ;;  %v868_v42 = vld [vmem:[%s1579_s3 + $0x98] sm:$0xf]  ;;  %v867_v43 = vld [vmem:[%s1579_s3 + $0x90] sm:$0xff] }
  0x12   :  { %v57_v9 = vmul.f32 %v53_v7, %v51_v0  ;;  %v63_v10 = vstv %s62_s30  ;;  %v56_v11 = vmul.f32 %v53_v7, %v50_v2  ;;  %v55_v12 = vmul.f32 %v53_v7, %v49_v3  ;;  %s1116_s10 = sld [smem:[#allocation4 + $0x2]]  ;;  %v828_v45 = vld [vmem:[%s1580_s4 + $0x20] sm:$0xff]  ;;  %v866_v47 = vld [vmem:[%s1579_s3 + $0x88] sm:$0xff]  ;;  %v873_v50 = vld [vmem:[%s1580_s4 + $0x98] sm:$0xf] }
  0x13   :  { %v67_v14 = vmul.f32 %v63_v10, %v61_v1  ;;  %v66_v15 = vmul.f32 %v63_v10, %v60_v4  ;;  %v65_v16 = vmul.f32 %v63_v10, %v59_v5  ;;  %v54_v17 = vmul.f32 %v53_v7, %v48_v6  ;;  %s1146_s22 = sld [smem:[#allocation2 + $0x5]]  ;;  %v835_v53 = vld [vmem:[%s1578_s2 + $0x58] sm:$0xf]  ;;  %v820_v59 = vld [vmem:[%s1578_s2 + $0x30] sm:$0xff]  ;;  %v860_v60 = vld [vmem:[%s1578_s2 + $0x80] sm:$0xff] }
  0x14   :  { %v64_v23 = vmul.f32 %v63_v10, %v58_v8  ;;  %v1125_v24 = vstv %s1070_s7  ;;  %v1128_v25 = vstv %s1075_s9  ;;  %v840_v54 = vld [vmem:[%s1579_s3 + $0x58] sm:$0xf]  ;;  %v865_v61 = vld [vmem:[%s1579_s3 + $0x80] sm:$0xff]  ;;  %s1188_s23 = sld [smem:[#allocation2 + $0x3]] }
  0x15   :  { %v71_v26 = vadd.f32 %v67_v14, %v57_v9  ;;  %v70_v27 = vadd.f32 %v66_v15, %v56_v11  ;;  %v69_v28 = vadd.f32 %v65_v16, %v55_v12  ;;  %v87_v29 = vmul.f32 %v818_v13, %v1125_v24  ;;  %v872_v63 = vld [vmem:[%s1580_s4 + $0x90] sm:$0xff]  ;;  %v871_v1 = vld [vmem:[%s1580_s4 + $0x88] sm:$0xff]  ;;  %s1198_s0 = sld [smem:[#allocation4 + $0x3]]  ;;  %v845_v9 = vld [vmem:[%s1580_s4 + $0x58] sm:$0xf] }
  0x16   :  { %v68_v32 = vadd.f32 %v64_v23, %v54_v17  ;;  %v98_v33 = vmul.f32 %v823_v18, %v1128_v25  ;;  %v88_v34 = vmul.f32 %v819_v19, %v1125_v24  ;;  %v99_v35 = vmul.f32 %v824_v20, %v1128_v25  ;;  %v825_v6 = vld [vmem:[%s1579_s3 + $0x30] sm:$0xff]  ;;  %v874_v10 = vld [vmem:[%s1578_s2 + $0xa0] sm:$0xff]  ;;  %v833_v23 = vld [vmem:[%s1578_s2 + $0x48] sm:$0xff]  ;;  %s1277_s19 = sld [smem:[#allocation4 + $0x6]] }
  0x17   :  { %v79_v38 = vadd.f32 %v75_v21, %v71_v26  ;;  %v78_v39 = vadd.f32 %v74_v22, %v70_v27  ;;  %v191_v41 = vstv %s1086_s15  ;;  %s1164_s15 = sld [smem:[#allocation4 + $0x5]]  ;;  %v77_v48 = vadd.f32 %v73_v31, %v69_v28  ;;  %v870_v15 = vld [vmem:[%s1580_s4 + $0x80] sm:$0xff]  ;;  %v834_v16 = vld [vmem:[%s1578_s2 + $0x50] sm:$0xff]  ;;  %v838_v26 = vld [vmem:[%s1579_s3 + $0x48] sm:$0xff] }
  0x18   :  { %v102_v44 = vadd.f32 %v98_v33, %v87_v29  ;;  %v195_v46 = vmul.f32 %v863_v30, %v191_v41  ;;  %v202_v49 = vstv %s1100_s24  ;;  %v194_v51 = vmul.f32 %v862_v36, %v191_v41  ;;  %v839_v17 = vld [vmem:[%s1579_s3 + $0x50] sm:$0xff]  ;;  %v879_v22 = vld [vmem:[%s1579_s3 + $0xa0] sm:$0xff]  ;;  %s1290_s21 = sld [smem:[#allocation2 + $0x7]] }
  0x19   :  { %916 = vmatpush.msk.msra.mxu0 %vm338_vm0, %v79_v38  ;;  %v193_v52 = vmul.f32 %v861_v37, %v191_v41  ;;  %v76_v55 = vadd.f32 %v72_v40, %v68_v32  ;;  %v1177_v56 = vadd.f32 %v99_v35, %v88_v34  ;;  %v206_v57 = vmul.f32 %v868_v42, %v202_v49  ;;  %v832_v31 = vld [vmem:[%s1578_s2 + $0x40] sm:$0xff]  ;;  %v847_v37 = vld [vmem:[%s1578_s2 + $0x68] sm:$0xff]  ;;  %s1300_s28 = sld [smem:[#allocation4 + $0x7]] }
  0x1a   :  { %v205_v58 = vmul.f32 %v867_v43, %v202_v49  ;;  %v111_v62 = vadd.f32 %v828_v45, %v102_v44  ;;  %v204_v0 = vmul.f32 %v866_v47, %v202_v49  ;;  %v121_v2 = vstv %s1105_s27  ;;  %v837_v32 = vld [vmem:[%s1579_s3 + $0x40] sm:$0xff]  ;;  %v829_v38 = vld [vmem:[%s1580_s4 + $0x28] sm:$0xff]  ;;  %s1262_s27 = sld [smem:[#allocation2 + $0x6]] }
  0x1b   :  { %355 = vmatpush.msra.mxu0 %v78_v39  ;;  %v132_v3 = vstv %s1116_s10  ;;  %v210_v4 = vadd.f32 %v206_v57, %v195_v46  ;;  %v125_v7 = vmul.f32 %v835_v53, %v121_v2  ;;  %v1210_v12 = vmul.f32 %v820_v59, %v1125_v24  ;;  %v852_v44 = vld [vmem:[%s1579_s3 + $0x68] sm:$0xff]  ;;  %v884_v45 = vld [vmem:[%s1580_s4 + $0xa0] sm:$0xff] }
  0x1c   :  { %v209_v5 = vadd.f32 %v205_v58, %v194_v51  ;;  %v136_v8 = vmul.f32 %v840_v54, %v132_v3  ;;  %v208_v11 = vadd.f32 %v204_v0, %v193_v52  ;;  %v192_v13 = vmul.f32 %v860_v60, %v191_v41  ;;  %v844_v41 = vld [vmem:[%s1580_s4 + $0x50] sm:$0xff]  ;;  %v843_v47 = vld [vmem:[%s1580_s4 + $0x48] sm:$0xff]  ;;  %v842_v54 = vld [vmem:[%s1580_s4 + $0x40] sm:$0xff] }
  0x1d   :  { %356 = vmatpush.msra.mxu0 %v77_v48  ;;  %v203_v14 = vmul.f32 %v865_v61, %v202_v49  ;;  %v219_v18 = vadd.f32 %v873_v50, %v210_v4  ;;  %v1222_v21 = vstv %s1146_s22  ;;  %v100_v28 = vmul.f32 %v825_v6, %v1128_v25  ;;  %v875_v51 = vld [vmem:[%s1578_s2 + $0xa8] sm:$0xff]  ;;  %v853_v0 = vld [vmem:[%s1579_s3 + $0x70] sm:$0xff] }
  0x1e   :  { %v218_v19 = vadd.f32 %v872_v63, %v209_v5  ;;  %v140_v20 = vadd.f32 %v136_v8, %v125_v7  ;;  %v217_v27 = vadd.f32 %v871_v1, %v208_v11  ;;  %v227_v30 = vmul.f32 %v874_v10, %v1222_v21  ;;  %v880_v58 = vld [vmem:[%s1579_s3 + $0xa8] sm:$0xff]  ;;  %v848_v63 = vld [vmem:[%s1578_s2 + $0x70] sm:$0xff]  ;;  %v877_v5 = vld [vmem:[%s1578_s2 + $0xb8] sm:$0xf] }
  0x1f   :  { %357 = vmatpush.msra.mxu0 %v76_v55  ;;  %v207_v29 = vadd.f32 %v203_v14, %v192_v13  ;;  %926 = vmatpush.msk.msra.mxu2 %vm338_vm0, %v219_v18  ;;  %v1244_v34 = vstv %s1164_s15  ;;  %v124_v35 = vmul.f32 %v834_v16, %v121_v2  ;;  %v135_v36 = vmul.f32 %v839_v17, %v132_v3  ;;  %v830_v10 = vld [vmem:[%s1580_s4 + $0x30] sm:$0xff]  ;;  %v821_v11 = vld [vmem:[%s1578_s2 + $0x38] sm:$0xf] }
  0x20   :  { %917 = vmatmul.msk.f32.vlgmr.msra.gmra.mxu0 %vm325_vm1, %v111_v62  ;;  %v149_v33 = vadd.f32 %v845_v9, %v140_v20  ;;  %v238_v40 = vmul.f32 %v879_v22, %v1244_v34  ;;  %v123_v42 = vmul.f32 %v833_v23, %v121_v2  ;;  %v134_v43 = vmul.f32 %v838_v26, %v132_v3  ;;  %v882_v9 = vld [vmem:[%s1579_s3 + $0xb8] sm:$0xf]  ;;  %v881_v20 = vld [vmem:[%s1579_s3 + $0xb0] sm:$0xff] }
  0x21   :  { %v1252_v39 = vadd.f32 %v870_v15, %v207_v29  ;;  %989 = vmatpush.msk.msra.mxu3 %vm338_vm0, %v219_v18  ;;  %443 = vmatpush.msra.mxu2 %v218_v19  ;;  %v139_v46 = vadd.f32 %v135_v36, %v124_v35  ;;  %v122_v48 = vmul.f32 %v832_v31, %v121_v2  ;;  %v1272_v50 = vstv %s1188_s23  ;;  %v826_v16 = vld [vmem:[%s1579_s3 + $0x38] sm:$0xf]  ;;  %v858_v23 = vld [vmem:[%s1580_s4 + $0x70] sm:$0xff] }
  0x22   :  { %985 = vmatpush.msk.msra.mxu1 %vm338_vm0, %v149_v33  ;;  %v133_v49 = vmul.f32 %v837_v32, %v132_v3  ;;  %v242_v52 = vadd.f32 %v238_v40, %v227_v30  ;;  %v138_v53 = vadd.f32 %v134_v43, %v123_v42  ;;  %v158_v55 = vmul.f32 %v847_v37, %v1272_v50  ;;  %v896_v35 = vld [vmem:[%s1579_s3 + $0xd8] sm:$0xf]  ;;  %v890_v37 = vld [vmem:[%s1578_s2 + $0xd0] sm:$0xff]  ;;  %v889_v42 = vld [vmem:[%s1578_s2 + $0xc8] sm:$0xff] }
  0x23   :  { %v1284_v57 = vstv %s1198_s0  ;;  %921 = vmatpush.msk.msrb.mxu0 %vm338_vm0, %v149_v33  ;;  %990 = vmatpush.msra.mxu3 %v218_v19  ;;  %v112_v59 = vadd.f32 %v829_v38, %v1177_v56  ;;  %v148_v60 = vadd.f32 %v844_v41, %v139_v46  ;;  %v104_v1 = vadd.f32 %v100_v28, %v1210_v12  ;;  %v857_v56 = vld [vmem:[%s1580_s4 + $0x68] sm:$0xff]  ;;  %v876_v19 = vld [vmem:[%s1578_s2 + $0xb0] sm:$0xff]  ;;  %v891_v28 = vld [vmem:[%s1578_s2 + $0xd8] sm:$0xf] }
  0x24   :  { %444 = vmatpush.msra.mxu2 %v217_v27  ;;  %v137_v61 = vadd.f32 %v133_v49, %v122_v48  ;;  %v169_v62 = vmul.f32 %v852_v44, %v1284_v57  ;;  %v251_v2 = vadd.f32 %v884_v45, %v242_v52  ;;  %v147_v3 = vadd.f32 %v843_v47, %v138_v53  ;;  %v885_v12 = vld [vmem:[%s1580_s4 + $0xa8] sm:$0xff]  ;;  %v849_v33 = vld [vmem:[%s1578_s2 + $0x78] sm:$0xf]  ;;  %v895_v41 = vld [vmem:[%s1579_s3 + $0xd0] sm:$0xff] }
  0x25   :  { %v228_v4 = vmul.f32 %v875_v51, %v1222_v21  ;;  %991 = vmatpush.msra.mxu3 %v217_v27  ;;  %986 = vmatpush.msra.mxu1 %v148_v60  ;;  %v239_v8 = vmul.f32 %v880_v58, %v1244_v34  ;;  %v159_v13 = vmul.f32 %v848_v63, %v1272_v50  ;;  %v887_v27 = vld [vmem:[%s1580_s4 + $0xb8] sm:$0xf]  ;;  %v261_v29 = vstv %s1262_s27  ;;  %v888_v51 = vld [vmem:[%s1578_s2 + $0xc0] sm:$0xff]  ;;  %v900_v63 = vld [vmem:[%s1580_s4 + $0xd0] sm:$0xff] }
  0x26   :  { %445 = vmatpush.msra.mxu2 %v1252_v39  ;;  %v146_v6 = vadd.f32 %v842_v54, %v137_v61  ;;  %v173_v7 = vadd.f32 %v169_v62, %v158_v55  ;;  %399 = vmatpush.msrb.mxu0 %v148_v60  ;;  %v170_v14 = vmul.f32 %v853_v0, %v1284_v57  ;;  %v272_v36 = vstv %s1277_s19  ;;  %v854_v40 = vld [vmem:[%s1579_s3 + $0x78] sm:$0xf]  ;;  %v907_v60 = vld [vmem:[%s1579_s3 + $0xe0] sm:$0xff] }
  0x27   :  { %927 = vmatmul.msk.f32.vlgmr.msra.gmra.mxu2 %vm325_vm1, %v251_v2  ;;  %987 = vmatpush.msra.mxu1 %v147_v3  ;;  %v243_v17 = vadd.f32 %v239_v8, %v228_v4  ;;  %v230_v18 = vmul.f32 %v877_v5, %v1222_v21  ;;  %v241_v26 = vmul.f32 %v882_v9, %v1244_v34  ;;  %v1381_v45 = vstv %s1300_s28  ;;  %v901_v54 = vld [vmem:[%s1580_s4 + $0xd8] sm:$0xf]  ;;  %v886_v2 = vld [vmem:[%s1580_s4 + $0xb0] sm:$0xff]  ;;  %v851_v8 = vld [vmem:[%s1579_s3 + $0x60] sm:$0xff] }
  0x28   :  { %918 = vmatmul.msk.f32.gmra.mxu0 %vm325_vm1, %v112_v59  ;;  %v182_v15 = vadd.f32 %v857_v56, %v173_v7  ;;  %992 = vmatpush.msra.mxu3 %v1252_v39  ;;  %v174_v22 = vadd.f32 %v170_v14, %v159_v13  ;;  %v113_v30 = vadd.f32 %v830_v10, %v104_v1  ;;  %v902_v59 = vld [vmem:[%s1578_s2 + $0xe0] sm:$0xff]  ;;  %v899_v56 = vld [vmem:[%s1580_s4 + $0xc8] sm:$0xff] }
  0x29   :  { %400 = vmatpush.msrb.mxu0 %v147_v3  ;;  %988 = vmatpush.msra.mxu1 %v146_v6  ;;  %v90_v31 = vmul.f32 %v821_v11, %v1125_v24  ;;  %v252_v32 = vadd.f32 %v885_v12, %v243_v17  ;;  %v245_v24 = vadd.f32 %v241_v26, %v230_v18  ;;  %v846_v7 = vld [vmem:[%s1578_s2 + $0x60] sm:$0xff] }
  0x2a   :  { %923 = vmatmul.msk.f32.vlgmr.msra.gmra.mxu1 %vm325_vm1, %v182_v15  ;;  %v229_v38 = vmul.f32 %v876_v19, %v1222_v21  ;;  %v240_v39 = vmul.f32 %v881_v20, %v1244_v34  ;;  %v101_v43 = vmul.f32 %v826_v16, %v1128_v25  ;;  %v265_v44 = vmul.f32 %v891_v28, %v261_v29  ;;  %v894_v21 = vld [vmem:[%s1579_s3 + $0xc8] sm:$0xff]  ;;  %v893_v25 = vld [vmem:[%s1579_s3 + $0xc0] sm:$0xff] }
  0x2b   :  { %401 = vmatpush.msrb.mxu0 %v146_v6  ;;  %v1378_v34 = vstv %s1290_s21  ;;  %v183_v46 = vadd.f32 %v858_v23, %v174_v22  ;;  %v254_v47 = vadd.f32 %v887_v27, %v245_v24  ;;  %v276_v48 = vmul.f32 %v896_v35, %v272_v36  ;;  %v831_v6 = vld [vmem:[%s1580_s4 + $0x38] sm:$0xf]  ;;  %v898_v16 = vld [vmem:[%s1580_s4 + $0xc0] sm:$0xff]  ;;  %v903_v22 = vld [vmem:[%s1578_s2 + $0xe8] sm:$0xff] }
  0x2c   :  { %v264_v49 = vmul.f32 %v890_v37, %v261_v29  ;;  %v160_v52 = vmul.f32 %v849_v33, %v1272_v50  ;;  %v171_v53 = vmul.f32 %v854_v40, %v1284_v57  ;;  %v275_v55 = vmul.f32 %v895_v41, %v272_v36  ;;  %v912_v20 = vld [vmem:[%s1580_s4 + $0xe0] sm:$0xff]  ;;  %v908_v23 = vld [vmem:[%s1579_s3 + $0xe8] sm:$0xff]  ;;  %v904_v24 = vld [vmem:[%s1578_s2 + $0xf0] sm:$0xff] }
  0x2d   :  { %v263_v58 = vmul.f32 %v889_v42, %v261_v29  ;;  %930 = vmatmul.msk.f32.vlgmr.msra.gmra.mxu3 %vm325_vm1, %v254_v47  ;;  %v244_v61 = vadd.f32 %v240_v39, %v229_v38  ;;  %v280_v62 = vadd.f32 %v276_v48, %v265_v44  ;;  %v274_v0 = vmul.f32 %v894_v21, %v272_v36  ;;  %v913_v37 = vld [vmem:[%s1580_s4 + $0xe8] sm:$0xff]  ;;  %v909_v38 = vld [vmem:[%s1579_s3 + $0xf0] sm:$0xff]  ;;  %v905_v21 = vld [vmem:[%s1578_s2 + $0xf8] sm:$0xf] }
  0x2e   :  { %v105_v1 = vadd.f32 %v101_v43, %v90_v31  ;;  %v279_v3 = vadd.f32 %v275_v55, %v264_v49  ;;  %v262_v4 = vmul.f32 %v888_v51, %v261_v29  ;;  %v273_v5 = vmul.f32 %v893_v25, %v272_v36  ;;  %v859_v29 = vld [vmem:[%s1580_s4 + $0x78] sm:$0xf]  ;;  %v914_v44 = vld [vmem:[%s1580_s4 + $0xf0] sm:$0xff] }
  0x2f   :  { %928 = vmatmul.msk.f32.gmra.mxu2 %vm325_vm1, %v252_v32  ;;  %v289_v9 = vadd.f32 %v901_v54, %v280_v62  ;;  %v278_v10 = vadd.f32 %v274_v0, %v263_v58  ;;  %v297_v11 = vmul.f32 %v902_v59, %v1378_v34  ;;  %v308_v12 = vmul.f32 %v907_v60, %v1381_v45  ;;  %v915_v25 = vld [vmem:[%s1580_s4 + $0xf8] sm:$0xf] }
  0x30   :  { %919 = vmatmul.msk.f32.gmra.mxu0 %vm325_vm1, %v113_v30  ;;  %v175_v13 = vadd.f32 %v171_v53, %v160_v52  ;;  %v288_v14 = vadd.f32 %v900_v63, %v279_v3  ;;  %v277_v15 = vadd.f32 %v273_v5, %v262_v4  ;;  %v253_v17 = vadd.f32 %v886_v2, %v244_v61 }
  0x31   :  { %931 = vmatpush.msk.msrb.mxu3 %vm338_vm0, %v289_v9  ;;  %v287_v18 = vadd.f32 %v899_v56, %v278_v10  ;;  %v312_v19 = vadd.f32 %v308_v12, %v297_v11  ;;  %v114_v26 = vadd.f32 %v831_v6, %v105_v1  ;;  %v157_v27 = vmul.f32 %v846_v7, %v1272_v50 }
  0x32   :  { %924 = vmatmul.msk.f32.gmra.mxu1 %vm325_vm1, %v183_v46  ;;  %v168_v28 = vmul.f32 %v851_v8, %v1284_v57  ;;  %v286_v30 = vadd.f32 %v898_v16, %v277_v15  ;;  %v298_v32 = vmul.f32 %v903_v22, %v1378_v34  ;;  %v309_v33 = vmul.f32 %v908_v23, %v1381_v45  ;;  %v856_v57 = vld [vmem:[%s1580_s4 + $0x60] sm:$0xff]  ;;  %v910_v46 = vld [vmem:[%s1579_s3 + $0xf8] sm:$0xf]  ;;  %v637_v15 = vld [vmem:[%s1581_s5 + $0x10] sm:$0xff] }
  0x33   :  { %487 = vmatpush.msrb.mxu3 %v288_v14  ;;  %v321_v31 = vadd.f32 %v912_v20, %v312_v19  ;;  %v184_v35 = vadd.f32 %v859_v29, %v175_v13  ;;  %v299_v41 = vmul.f32 %v904_v24, %v1378_v34  ;;  %v310_v42 = vmul.f32 %v909_v38, %v1381_v45  ;;  %v967_v8 = vld [vmem:[%s1581_s5 + $0x38] sm:$0xf]  ;;  %v966_v14 = vld [vmem:[%s1581_s5 + $0x30] sm:$0xff]  ;;  %v965_v16 = vld [vmem:[%s1581_s5 + $0x28] sm:$0xff] }
  0x34   :  { %v172_v50 = vadd.f32 %v168_v28, %v157_v27  ;;  %v313_v36 = vadd.f32 %v309_v33, %v298_v32  ;;  %v300_v48 = vmul.f32 %v905_v21, %v1378_v34  ;;  %v311_v49 = vmul.f32 %v910_v46, %v1381_v45  ;;  %v638_v13 = vld [vmem:[%s1581_s5 + $0x18] sm:$0xf]  ;;  %v635_v19 = vld [vmem:[%s1581_s5] sm:$0xff] }
  0x35   :  { %488 = vmatpush.msrb.mxu3 %v287_v18  ;;  %v314_v43 = vadd.f32 %v310_v42, %v299_v41  ;;  %v964_v18 = vld [vmem:[%s1581_s5 + $0x20] sm:$0xff] }
  0x36   :  { %v181_v39 = vadd.f32 %v856_v57, %v172_v50  ;;  %v322_v40 = vadd.f32 %v913_v37, %v313_v36  ;;  %v315_v51 = vadd.f32 %v311_v49, %v300_v48 }
  0x37   :  { %929 = vmatmul.msk.f32.gmra.mxu2 %vm325_vm1, %v253_v17  ;;  %489 = vmatpush.msrb.mxu3 %v286_v30  ;;  %v323_v47 = vadd.f32 %v914_v44, %v314_v43  ;;  %v636_v17 = vld [vmem:[%s1581_s5 + $0x8] sm:$0xff] }
  0x38   :  { %920 = vmatmul.msk.f32.gmra.mxu0 %vm325_vm1, %v114_v26  ;;  %932 = vmatmul.msk.f32.vlgmr.msrb.gmra.mxu3 %vm325_vm1, %v321_v31  ;;  %v324_v52 = vadd.f32 %v915_v25, %v315_v51 }
  0x3a   :  { %925 = vmatmul.msk.f32.gmra.mxu1 %vm325_vm1, %v184_v35 }
  0x40   :  { %922 = vmatmul.msk.f32.vlgmr.msrb.gmra.mxu0 %vm325_vm1, %v181_v39  ;;  %933 = vmatmul.msk.f32.gmra.mxu3 %vm325_vm1, %v322_v40 }
  0x48   :  { %934 = vmatmul.msk.f32.gmra.mxu3 %vm325_vm1, %v323_v47 }
  0x50   :  { %935 = vmatmul.msk.f32.gmra.mxu3 %vm325_vm1, %v324_v52 }
  0x9d   :  { %v359_v53 = vpop.f32.mrf.mxu0 }
  0xa5   :  { %v362_v54 = vpop.f32.mrf.mxu0 }
  0xa7   :  { %v406_v59 = vpop.f32.mrf.mxu1 }
  0xaa   :  { %v447_v55 = vpop.f32.mrf.mxu2 }
  0xad   :  { %v365_v58 = vpop.f32.mrf.mxu0 }
  0xaf   :  { %v409_v45 = vpop.f32.mrf.mxu1 }
  0xb0   :  { %v456_v61 = vpop.f32.mrf.mxu3 }
  0xb1   :  { %941 = vmatpush.msk.msrb.mxu1 %vm338_vm0, %v456_v61 }
  0xb2   :  { %v450_v60 = vpop.f32.mrf.mxu2 }
  0xb5   :  { %v368_v34 = vpop.f32.mrf.mxu0 }
  0xb6   :  { %936 = vmatpush.msk.msra.mxu0 %vm338_vm0, %v368_v34  ;;  %993 = vmatpush.msk.msra.mxu3 %vm338_vm0, %v368_v34 }
  0xb7   :  { %v412_v1 = vpop.f32.mrf.mxu1 }
  0xb8   :  { %531 = vmatpush.msra.mxu0 %v365_v58  ;;  %994 = vmatpush.msra.mxu3 %v365_v58 }
  0xba   :  { %532 = vmatpush.msra.mxu0 %v362_v54  ;;  %995 = vmatpush.msra.mxu3 %v362_v54  ;;  %v453_v62 = vpop.f32.mrf.mxu2 }
  0xbb   :  { %575 = vmatpush.msrb.mxu1 %v453_v62  ;;  %v491_v0 = vpop.f32.mrf.mxu3 }
  0xbc   :  { %533 = vmatpush.msra.mxu0 %v359_v53  ;;  %996 = vmatpush.msra.mxu3 %v359_v53 }
  0xbd   :  { %v403_v63 = vpop.f32.mrf.mxu0  ;;  %939 = vmatmul.msk.f32.vlgmr.msra.gmra.mxu3 %vm325_vm1, %v409_v45  ;;  %576 = vmatpush.msrb.mxu1 %v450_v60 }
  0xbe   :  { %937 = vmatmul.msk.f32.vlgmr.msra.gmra.mxu0 %vm325_vm1, %v403_v63  ;;  %951 = vmatpush.msk.msrb.mxu3 %vm338_vm0, %v638_v13 }
  0xbf   :  { %577 = vmatpush.msrb.mxu1 %v447_v55 }
  0xc0   :  { %942 = vmatmul.msk.f32.vlgmr.msrb.gmra.mxu1 %vm325_vm1, %v491_v0  ;;  %667 = vmatpush.msrb.mxu3 %v637_v15 }
  0xc1   :  { %968 = vmatpush.msk.msra.mxu1 %vm338_vm0, %v967_v8 }
  0xc2   :  { %668 = vmatpush.msrb.mxu3 %v636_v17 }
  0xc3   :  { %v494_v2 = vpop.f32.mrf.mxu3  ;;  %750 = vmatpush.msra.mxu1 %v966_v14 }
  0xc4   :  { %669 = vmatpush.msrb.mxu3 %v635_v19 }
  0xc5   :  { %940 = vmatmul.msk.f32.gmra.mxu3 %vm325_vm1, %v412_v1  ;;  %751 = vmatpush.msra.mxu1 %v965_v16 }
  0xc6   :  { %938 = vmatmul.msk.f32.gmra.mxu0 %vm325_vm1, %v406_v59 }
  0xc7   :  { %752 = vmatpush.msra.mxu1 %v964_v18 }
  0xc8   :  { %943 = vmatmul.msk.f32.gmra.mxu1 %vm325_vm1, %v494_v2 }
  0xcb   :  { %v497_v3 = vpop.f32.mrf.mxu3 }
  0xd0   :  { %944 = vmatmul.msk.f32.gmra.mxu1 %vm325_vm1, %v497_v3 }
  0xd3   :  { %v500_v56 = vpop.f32.mrf.mxu3 }
  0xd8   :  { %945 = vmatmul.msk.f32.gmra.mxu1 %vm325_vm1, %v500_v56 }
 0x13b   :  { %v535_v5 = vpop.f32.mrf.mxu0 }
 0x13d   :  { %v579_v6 = vpop.f32.mrf.mxu1 }
 0x140   :  { %v541_v4 = vpop.f32.mrf.mxu3 }
 0x143   :  { %v538_v9 = vpop.f32.mrf.mxu0 }
 0x145   :  { %v582_v10 = vpop.f32.mrf.mxu1 }
 0x148   :  { %v544_v7 = vpop.f32.mrf.mxu3 }
 0x149   :  { %946 = vmatpush.msk.msrb.mxu2 %vm338_vm0, %v544_v7 }
 0x14b   :  { %619 = vmatpush.msrb.mxu2 %v541_v4 }
 0x14d   :  { %620 = vmatpush.msrb.mxu2 %v538_v9  ;;  %v585_v11 = vpop.f32.mrf.mxu1 }
 0x14f   :  { %621 = vmatpush.msrb.mxu2 %v535_v5 }
 0x150   :  { %947 = vmatmul.msk.f32.vlgmr.msrb.gmra.mxu2 %vm325_vm1, %v579_v6 }
 0x155   :  { %v588_v12 = vpop.f32.mrf.mxu1 }
 0x158   :  { %948 = vmatmul.msk.f32.gmra.mxu2 %vm325_vm1, %v582_v10 }
 0x160   :  { %949 = vmatmul.msk.f32.gmra.mxu2 %vm325_vm1, %v585_v11 }
 0x168   :  { %950 = vmatmul.msk.f32.gmra.mxu2 %vm325_vm1, %v588_v12 }
 0x1d3   :  { %v623_v20 = vpop.f32.mrf.mxu2 }
 0x1d4   :  { %952 = vmatmul.msk.f32.vlgmr.msrb.gmra.mxu3 %vm325_vm1, %v623_v20  ;;  %969 = vmatmul.msk.f32.vlgmr.msra.gmra.mxu1 %vm325_vm1, %v623_v20 }
 0x1db   :  { %v626_v22 = vpop.f32.mrf.mxu2 }
 0x1dc   :  { %953 = vmatmul.msk.f32.gmra.mxu3 %vm325_vm1, %v626_v22  ;;  %970 = vmatmul.msk.f32.gmra.mxu1 %vm325_vm1, %v626_v22 }
 0x1e3   :  { %v629_v23 = vpop.f32.mrf.mxu2 }
 0x1e4   :  { %954 = vmatmul.msk.f32.gmra.mxu3 %vm325_vm1, %v629_v23  ;;  %971 = vmatmul.msk.f32.gmra.mxu1 %vm325_vm1, %v629_v23 }
 0x1eb   :  { %v632_v26 = vpop.f32.mrf.mxu2 }
 0x1ec   :  { %956 = vmatpush.xpose.msk.msrb.mxu0 %vm325_vm1, %v632_v26  ;;  %973 = vmatpush.xpose.msk.msra.mxu2 %vm325_vm1, %v632_v26 }
 0x1ed   :  { %955 = vmatmul.msk.f32.gmra.mxu3 %vm325_vm1, %v632_v26  ;;  %972 = vmatmul.msk.f32.gmra.mxu1 %vm325_vm1, %v632_v26 }
 0x1f0   :  { %957 = vmatpush.xpose.msk.msrb.mxu0 %vm325_vm1, %v629_v23  ;;  %974 = vmatpush.xpose.msk.msra.mxu2 %vm325_vm1, %v629_v23 }
 0x1f4   :  { %958 = vmatpush.xpose.msk.msrb.mxu0 %vm325_vm1, %v626_v22  ;;  %975 = vmatpush.xpose.msk.msra.mxu2 %vm325_vm1, %v626_v22 }
 0x1f8   :  { %959 = vmatpush.xpose.msk.msrb.mxu0 %vm325_vm1, %v623_v20  ;;  %976 = vmatpush.xpose.msk.msra.mxu2 %vm325_vm1, %v623_v20 }
 0x251   :  { %v754_v27 = vpop.f32.mrf.mxu1 }
 0x252   :  { %977 = vmatmul.msk.f32.vlgmr.msra.gmra.mxu2 %vm325_vm1, %v754_v27 }
 0x257   :  { %v671_v28 = vpop.f32.mrf.mxu3 }
 0x258   :  { %960 = vmatmul.msk.f32.vlgmr.msrb.gmra.mxu0 %vm325_vm1, %v671_v28 }
 0x259   :  { %v757_v29 = vpop.f32.mrf.mxu1 }
 0x25a   :  { %978 = vmatmul.msk.f32.gmra.mxu2 %vm325_vm1, %v757_v29 }
 0x25f   :  { %v674_v30 = vpop.f32.mrf.mxu3 }
 0x260   :  { %961 = vmatmul.msk.f32.gmra.mxu0 %vm325_vm1, %v674_v30 }
 0x261   :  { %v760_v31 = vpop.f32.mrf.mxu1 }
 0x262   :  { %979 = vmatmul.msk.f32.gmra.mxu2 %vm325_vm1, %v760_v31 }
 0x267   :  { %v677_v32 = vpop.f32.mrf.mxu3 }
 0x268   :  { %962 = vmatmul.msk.f32.gmra.mxu0 %vm325_vm1, %v677_v32 }
 0x26a   :  { %v763_v33 = vpop.f32.mrf.mxu1 }
 0x26b   :  { %980 = vmatmul.msk.f32.gmra.mxu2 %vm325_vm1, %v763_v33 }
 0x270   :  { %v680_v35 = vpop.f32.mrf.mxu3 }
 0x271   :  { %963 = vmatmul.msk.f32.gmra.mxu0 %vm325_vm1, %v680_v35 }
 0x2d5   :  { %v712_v50 = vpop.f32.mrf.mxu0  ;;  %v795_v57 = vpop.f32.mrf.mxu2 }
 0x2d6   :  { %724 = vst.msk [vmem:[%s1582_s6] sm:$0xff] %vm325_vm1, %v712_v50 }
 0x2d7   :  { %981 = vst.msk [vmem:[%s1582_s6 + $0x20] sm:$0xff] %vm325_vm1, %v795_v57 }
 0x2dd   :  { %v715_v36 = vpop.f32.mrf.mxu0  ;;  %v798_v37 = vpop.f32.mrf.mxu2 }
 0x2de   :  { %725 = vst.msk [vmem:[%s1582_s6 + $0x8] sm:$0xff] %vm325_vm1, %v715_v36 }
 0x2df   :  { %982 = vst.msk [vmem:[%s1582_s6 + $0x28] sm:$0xff] %vm325_vm1, %v798_v37 }
 0x2e5   :  { %v718_v24 = vpop.f32.mrf.mxu0  ;;  %v801_v38 = vpop.f32.mrf.mxu2 }
 0x2e6   :  { %726 = vst.msk [vmem:[%s1582_s6 + $0x10] sm:$0xff] %vm325_vm1, %v718_v24 }
 0x2e7   :  { %983 = vst.msk [vmem:[%s1582_s6 + $0x30] sm:$0xff] %vm325_vm1, %v801_v38 }
 0x2ee   :  { %v721_v39 = vpop.f32.mrf.mxu0  ;;  %v804_v40 = vpop.f32.mrf.mxu2 }
 0x2ef   :  { %728 = vst.msk [vmem:[%s1582_s6 + $0x18] sm:$0xf] %vm727_vm2, %v721_v39 }
 0x2f0   :  { %984 = vst.msk [vmem:[%s1582_s6 + $0x38] sm:$0xf] %vm727_vm2, %v804_v40 }
 0x2f1   :  { %816 = vsyncpa [#allocation3], 1 }
 0x2f2   :  { %817 = vsyncpa [#allocation5], 1 }

</bundles_post_ra>
